<compile_context>
chip_gen: v7x
topology: tpu7x:2x2x1
jax: 0.10.0
libtpu: 0.0.40
codegen_flags: <defaults>
</compile_context>

<pallas_src>
from functools import partial

import jax
import jax.numpy as jnp
from jax.experimental import pallas as pl
from jax.experimental.pallas import tpu as pltpu


# ----------------------------------------------------------------------------
# Kernel
# ----------------------------------------------------------------------------
def _decoder_sd_kernel(z_ref, w_ref, b_ref, o_ref, *, compute_dtype, precision):
    # z tile: (tm, K), w tile: (K, tn), bias: (1, tn), out: (tm, tn)
    z = z_ref[...]
    w = w_ref[...]
    if z.dtype != compute_dtype:
        z = z.astype(compute_dtype)
    if w.dtype != compute_dtype:
        w = w.astype(compute_dtype)
    acc = jax.lax.dot_general(
        z, w,
        dimension_numbers=(((1,), (0,)), ((), ())),
        preferred_element_type=jnp.float32,
        precision=precision,
    )
    # Bias add in f32 on the VPU, narrow (if requested) only at the store.
    o_ref[...] = (acc + b_ref[...]).astype(o_ref.dtype)


# ----------------------------------------------------------------------------
# One-time parameter preparation (outside the hot path)
# ----------------------------------------------------------------------------
def prepare_decoder_sd_params(weight, bias, *, param_dtype=None):
    """weight: (2*hidden, latent_num) PyTorch layout; bias: (2*hidden,).

    Returns (weight_t, bias2d) where weight_t is (latent_num, 2*hidden) in
    `param_dtype` (default: keep dtype) and bias2d is (1, 2*hidden) float32.
    Do this ONCE when loading parameters, not per forward call."""
    out_dim, latent_num = weight.shape
    assert bias.shape == (out_dim,)
    w_t = jnp.transpose(weight)
    if param_dtype is not None:
        w_t = w_t.astype(param_dtype)
    b2d = bias.astype(jnp.float32).reshape(1, out_dim)
    return w_t, b2d


# ----------------------------------------------------------------------------
# Tiling helpers
# ----------------------------------------------------------------------------
_VMEM_BUDGET = 24 * 1024 * 1024       # conservative vs v7x 32 MiB scoped default
_VMEM_LIMIT = 32 * 1024 * 1024


def _pick_tile(dim, align, cap):
    """Largest multiple of `align` that divides `dim` and is <= cap.
    Requires dim % align == 0."""
    t = max(align, min(dim, cap))
    t -= t % align
    while dim % t != 0:
        t -= align
    return t


def _select_tiles(Bp, K, out_dim, z_isz, w_isz, o_isz):
    # --- N tile ---------------------------------------------------------
    if out_dim % 128 == 0:
        # Prefer the full output width (weight resident, lane-dense stores)
        # when the double-buffered weight fits half the budget.
        if 2 * K * out_dim * w_isz <= _VMEM_BUDGET // 2:
            tn = out_dim
        else:
            n_align = 256 if out_dim % 256 == 0 else 128
            max_tn = max(n_align, (_VMEM_BUDGET // 2) // (2 * K * w_isz))
            tn = _pick_tile(out_dim, n_align, max_tn)
    else:
        # Non-128-aligned out_dim: Pallas requires the full extent here.
        # TODO(synk): pad N to a 128 multiple at param-prep if out_dim is both
        # huge and misaligned (not the case for typical hidden sizes).
        tn = out_dim

    # --- M tile ---------------------------------------------------------
    rem = _VMEM_BUDGET - 2 * K * tn * w_isz - 2 * tn * 4
    per_row = 2 * K * z_isz + 2 * tn * o_isz
    tm_cap = max(8, min(1024, rem // max(per_row, 1)))
    tm = _pick_tile(Bp, 8, tm_cap)
    # Keep >=2 M tiles when possible so both v7x TensorCores get work.
    if Bp // tm < 2 and Bp >= 16:
        tm = _pick_tile(Bp, 8, max(8, tm // 2))
    return tm, tn


# ----------------------------------------------------------------------------
# Forward
# ----------------------------------------------------------------------------
def decoder_sd_forward(z, weight_t, bias2d, hidden_size, *,
                       compute_dtype=jnp.bfloat16, out_dtype=None):
    """z: (B, latent_num); weight_t: (latent_num, 2*hidden) from
    prepare_decoder_sd_params; bias2d: (1, 2*hidden) float32.
    Returns (B, 2, hidden_size) in `out_dtype` (default: z.dtype).

    compute_dtype=bfloat16 (default): MXU-native inputs, f32 accumulation.
    compute_dtype=float32: exact parity path (precision=HIGHEST on the dot)."""
    B, K = z.shape
    Kw, out_dim = weight_t.shape
    assert Kw == K
    assert out_dim == 2 * hidden_size
    assert bias2d.shape == (1, out_dim)
    out_dtype = z.dtype if out_dtype is None else out_dtype

    z_isz = jnp.dtype(z.dtype).itemsize
    w_isz = jnp.dtype(weight_t.dtype).itemsize
    o_isz = jnp.dtype(out_dtype).itemsize

    # Pad rows to a sublane multiple so M tiling stays controllable on v7x.
    Bp = B if B % 8 == 0 else ((B + 7) // 8) * 8
    z_in = z if Bp == B else jnp.pad(z, ((0, Bp - B), (0, 0)))

    tm, tn = _select_tiles(Bp, K, out_dim, z_isz, w_isz, o_isz)
    gn, gm = out_dim // tn, Bp // tm
    # Grid order: N OUTER, M INNER -> weight/bias block index constant across
    # the inner loop, so the full weight is read from HBM exactly once.
    grid = (gn, gm)

    precision = (jax.lax.Precision.HIGHEST
                 if jnp.dtype(compute_dtype) == jnp.float32 else None)

    cost = pl.CostEstimate(
        flops=2 * Bp * K * out_dim,
        transcendentals=0,
        bytes_accessed=(gn * Bp * K * z_isz        # z re-streamed once per N tile
                        + K * out_dim * w_isz      # weight read once
                        + out_dim * 4              # bias read once
                        + Bp * out_dim * o_isz),   # output written once
    )

    out2d = pl.pallas_call(
        partial(_decoder_sd_kernel, compute_dtype=compute_dtype,
                precision=precision),
        out_shape=jax.ShapeDtypeStruct((Bp, out_dim), out_dtype),
        grid=grid,
        in_specs=[
            pl.BlockSpec((tm, K), lambda j, i: (i, 0)),    # z rows
            pl.BlockSpec((K, tn), lambda j, i: (0, j)),    # weight (resident per j)
            pl.BlockSpec((1, tn), lambda j, i: (0, j)),    # bias slice
        ],
        out_specs=pl.BlockSpec((tm, tn), lambda j, i: (i, j)),
        compiler_params=pltpu.CompilerParams(
            dimension_semantics=("parallel", "parallel"),
            vmem_limit_bytes=_VMEM_LIMIT,
        ),
        cost_estimate=cost,
    )(z_in, weight_t, bias2d)

    if Bp != B:
        out2d = out2d[:B]
    # Reshape glue: (B, 2*hidden) -> (B, 2, hidden). Free (no data movement).
    return out2d.reshape(B, 2, hidden_size)


# ----------------------------------------------------------------------------
# Self-test
# ----------------------------------------------------------------------------
if __name__ == "__main__":
    def make_case(batch, latent_num, hidden_size, key):
        k_z, k_w, k_b = jax.random.split(key, 3)
        bound = 1.0 / (latent_num ** 0.5)
        weight = jax.random.uniform(
            k_w, (2 * hidden_size, latent_num), jnp.float32, -bound, bound)
        bias = jax.random.uniform(
            k_b, (2 * hidden_size,), jnp.float32, -bound, bound)
        z = jax.random.normal(k_z, (batch, latent_num), jnp.float32)
        return z, weight, bias

    # Case 1: module-default small shapes, exact f32 parity path
    # (precision=HIGHEST on the dot, f32 params/output).
    B, L, H = 8, 16, 32
    z, w, b = make_case(B, L, H, jax.random.PRNGKey(0))
    w_t, b2d = prepare_decoder_sd_params(w, b)              # one-time prep, f32
    out = jax.block_until_ready(
        decoder_sd_forward(z, w_t, b2d, H,
                           compute_dtype=jnp.float32, out_dtype=jnp.float32))
    ref = (z @ w.T + b).reshape(B, 2, H)
    assert out.shape == (B, 2, H)
    assert jnp.allclose(out, ref, atol=1e-5, rtol=1e-5)

    # Case 2: production config — bf16 weight stored persistently (no per-call
    # cast), bf16 compute with f32 accumulation, bf16 output store, lane-dense
    # full-width output tile, 2 M tiles (both v7x TensorCores busy).
    B2, L2, H2 = 16, 16, 128
    z2, w2, b2 = make_case(B2, L2, H2, jax.random.PRNGKey(0))
    w2_t, b2_2d = prepare_decoder_sd_params(w2, b2, param_dtype=jnp.bfloat16)
    out2 = jax.block_until_ready(
        decoder_sd_forward(z2, w2_t, b2_2d, H2,
                           compute_dtype=jnp.bfloat16, out_dtype=jnp.bfloat16))
    ref2 = (z2 @ w2.T + b2).reshape(B2, 2, H2)
    assert out2.shape == (B2, 2, H2)
    assert jnp.allclose(out2.astype(jnp.float32), ref2, atol=5e-2, rtol=5e-2)

    print("KERNEL_OK")
</pallas_src>

<mosaic_0001>
module attributes {stable_mosaic.version = 11 : i64} {
  func.func @_decoder_sd_kernel(%arg0: i32, %arg1: i32, %arg2: memref<8x16xf32, #tpu.memory_space<vmem>>, %arg3: memref<16x64xf32, #tpu.memory_space<vmem>>, %arg4: memref<1x64xf32, #tpu.memory_space<vmem>>, %arg5: memref<8x64xf32, #tpu.memory_space<vmem>>) attributes {dimension_semantics = [#tpu.dimension_semantics<parallel>, #tpu.dimension_semantics<parallel>], iteration_bounds = array<i64: 1, 1>, scalar_prefetch = 0 : i64, scratch_operands = 0 : i64, tpu.core_type = #tpu.core_type<tc>, window_params = [{transform_indices = @transform_0, window_bounds = array<i64: 8, 16>}, {transform_indices = @transform_1, window_bounds = array<i64: 16, 64>}, {transform_indices = @transform_2, window_bounds = array<i64: 1, 64>}, {transform_indices = @transform_3, window_bounds = array<i64: 8, 64>}]} {
    %c0 = arith.constant 0 : index
    %c0_0 = arith.constant 0 : index
    %0 = vector.load %arg2[%c0, %c0_0] : memref<8x16xf32, #tpu.memory_space<vmem>>, vector<8x16xf32>
    %c0_1 = arith.constant 0 : index
    %c0_2 = arith.constant 0 : index
    %1 = vector.load %arg3[%c0_1, %c0_2] : memref<16x64xf32, #tpu.memory_space<vmem>>, vector<16x64xf32>
    %cst = arith.constant dense<0.000000e+00> : vector<8x64xf32>
    %2 = tpu.matmul %0, %1, %cst {dimension_numbers = #tpu.dot_dimension_numbers<[1], [0], [0], [1], [0, 0, 1, 1], [], []>, precision = #tpu.contract_precision<fp32>} : vector<8x16xf32>, vector<16x64xf32>, vector<8x64xf32> -> vector<8x64xf32>
    %c0_3 = arith.constant 0 : index
    %c0_4 = arith.constant 0 : index
    %3 = vector.load %arg4[%c0_3, %c0_4] : memref<1x64xf32, #tpu.memory_space<vmem>>, vector<1x64xf32>
    %4 = vector.broadcast %3 : vector<1x64xf32> to vector<8x64xf32>
    %5 = arith.addf %2, %4 : vector<8x64xf32>
    %c0_5 = arith.constant 0 : index
    %c0_6 = arith.constant 0 : index
    %6 = vector.load %arg5[%c0_5, %c0_6] : memref<8x64xf32, #tpu.memory_space<vmem>>, vector<8x64xf32>
    tpu.vector_store %arg5[%c0_5, %c0_6], %5 {strides = array<i32>} : memref<8x64xf32, #tpu.memory_space<vmem>>, vector<8x64xf32>,
    return
  }
  func.func @transform_0(%arg0: i32, %arg1: i32) -> (i32, i32) {
    %c0_i32 = arith.constant 0 : i32
    %c0_i32_0 = arith.constant 0 : i32
    return %arg1, %c0_i32 : i32, i32
  }
  func.func @transform_1(%arg0: i32, %arg1: i32) -> (i32, i32) {
    %c0_i32 = arith.constant 0 : i32
    %c0_i32_0 = arith.constant 0 : i32
    return %c0_i32, %arg0 : i32, i32
  }
  func.func @transform_2(%arg0: i32, %arg1: i32) -> (i32, i32) {
    %c0_i32 = arith.constant 0 : i32
    %c0_i32_0 = arith.constant 0 : i32
    return %c0_i32, %arg0 : i32, i32
  }
  func.func @transform_3(%arg0: i32, %arg1: i32) -> (i32, i32) {
    %c0_i32 = arith.constant 0 : i32
    return %arg1, %arg0 : i32, i32
  }
}

</mosaic_0001>

<bundles_post_ra>
// kernel: tpu_custom_call.1
= control target key start
LH: loop header
LB: loop body
LE: loop exit
PB: predicated region body
PF: predicated region fallthrough
CT: control target
= control target key end

     0   :  { %8 = vsyncpa [#allocation3], 0  ;;  %s781_s0 = inlined_call_operand.hbm [shape: f32[8,16], index: 0, kind: input, shape index: {}]   ;;  %s782_s1 = inlined_call_operand.hbm [shape: f32[16,64], index: 1, kind: input, shape index: {}]   ;;  %s783_s2 = inlined_call_operand.vmem [shape: f32[1,64], index: 2, kind: input, shape index: {}]   ;;  %s784_s3 = inlined_call_operand.hbm [shape: f32[8,64], index: 3, kind: output, shape index: {}]  }
   0x1   :  { %9 = vsyncpa [#allocation6], 0 }
   0x2   :  { %10 = vsyncpa [#allocation4], 0  ;;  %s701_s12 = smov [#allocation2]   ;;  %s702_s14 = smov [#allocation5]  }
   0x3   :  { %s17_s13 = sshll.u32 %s701_s12, 4  ;;  %s26_s15 = sshll.u32 %s702_s14, 4  ;;  %s18_s13 = int_to_ptr.vmem [resolvable:$true] %s17_s13  ;;  %s729_s15 = int_to_ptr.vmem [resolvable:$true] %s26_s15 }
   0x4   :  { %s629_s18 = scalar_lea.hbm %s781_s0, 128 }
   0x5   :  { %p630_p0 = scmp.ne.s32.totalorder %s781_s0, %s629_s18  ;;  %p633_p1 = scmp.lt.u32.totalorder %s629_s18, %s781_s0 }
   0x7   :  { %p635_p2 = pnand %p633_p1, %p630_p0 }
   0x9   :  { %638 = shalt.err (!%p635_p2)
}
   0xa   :  { %s639_s23 = scalar_lea.vmem %s18_s13, 128  ;;  %p644_p4 = scmp.lt.s32.totalorder %s18_s13, %s18_s13 }
   0xb   :  { %p640_p3 = scmp.ne.s32.totalorder %s18_s13, %s639_s23  ;;  %p645_p5 = scmp.lt.s32.totalorder %s639_s23, %s639_s23 }
   0xd   :  { %p646_p6 = por %p645_p5, %p644_p4 }
   0xf   :  { %p647_p7 = pnand %p646_p6, %p640_p3 }
  0x11   :  { %650 = shalt.err (!%p647_p7)
}
  0x12   :  { %20 = dma.hbm_to_vmem [thread:$0]  %s781_s0, 128, %s18_s13, [#allocation3]  }
  0x13   :  { %s651_s28 = scalar_lea.hbm %s782_s1, 256 }
  0x14   :  { %p652_p8 = scmp.ne.s32.totalorder %s782_s1, %s651_s28  ;;  %p655_p9 = scmp.lt.u32.totalorder %s651_s28, %s782_s1 }
  0x16   :  { %p657_p10 = pnand %p655_p9, %p652_p8 }
  0x18   :  { %660 = shalt.err (!%p657_p10)
}
  0x19   :  { %s661_s6 = scalar_lea.vmem %s729_s15, 256  ;;  %p666_p12 = scmp.lt.s32.totalorder %s729_s15, %s729_s15 }
  0x1a   :  { %p662_p11 = scmp.ne.s32.totalorder %s729_s15, %s661_s6  ;;  %p667_p13 = scmp.lt.s32.totalorder %s661_s6, %s661_s6 }
  0x1c   :  { %p668_p0 = por %p667_p13, %p666_p12 }
  0x1e   :  { %p669_p1 = pnand %p668_p0, %p662_p11 }
  0x20   :  { %672 = shalt.err (!%p669_p1)
}
  0x21   :  { %s703_s0 = smov 128   ;;  %s704_s7 = smov 8  }
  0x22   :  { %32 = dma.hbm_to_vmem [thread:$0]  %s782_s1, 256, %s729_s15, [#allocation6], %s703_s0, %s703_s0, %s704_s7  }
  0x23   :  { %695 = dma.done.wait [#allocation3], 128  }
  0x24   :  { %696 = vsyncadd [#allocation3], 4294967168 }
  0x25   :  { %697 = dma.done.wait [#allocation6], 256  }
  0x26   :  { %698 = vsyncadd [#allocation6], 4294967040  ;;  %v705_v0 = vmov 0.0|0.0   ;;  %vm706_vm0 = vmmov 0   ;;  %v707_v1 = vmov 0.0   ;;  %vm51_vm1 = vcmask 130048  }
  0x27   :  { %602 = vmatprep.subr.bf16.mxu0 %v705_v0  ;;  %576 = vmatprep.mubr.msk.f32.mxu0 %vm706_vm0, %v707_v1  ;;  %v42_v2 = vld [vmem:[#allocation5] sm:$0xff]  ;;  %v43_v3 = vld [vmem:[#allocation5 + $0x8] sm:$0xff]  ;;  %v41_v4 = vld [vmem:[#allocation2] sm:$0xff]  ;;  %s708_s11 = smov [#allocation7]   ;;  %vm514_vm2 = vcmask 523264  }
  0x28   :  { %593 = vmatprep.subr.bf16.mxu1 %v705_v0  ;;  %555 = vmatprep.mubr.msk.f32.mxu1 %vm706_vm0, %v707_v1  ;;  %v56_v5 = vand.u32 4294901760, %v42_v2  ;;  %v59_v6 = vand.u32 4294901760, %v43_v3  ;;  %v53_v7 = vsel %vm51_vm1, %v41_v4, 0  ;;  %v532_v27 = vld [vmem:[%s783_s2] ss:$0 sm:$0xff]  ;;  %s522_s12 = sshll.u32 %s708_s11, 4  ;;  %s523_s12 = int_to_ptr.vmem [resolvable:$true] %s522_s12 }
  0x29   :  { %v122_v8 = vand.u32 4294901760, %v53_v7  ;;  %s673_s13 = scalar_lea.vmem %s523_s12, 128  ;;  %p678_p3 = scmp.lt.s32.totalorder %s523_s12, %s523_s12 }
  0x2a   :  { %v594_v9 = vpack.c.bf16 %v59_v6, %v56_v5  ;;  %v134_v10 = vsub.f32 %v42_v2, %v56_v5  ;;  %v141_v11 = vsub.f32 %v43_v3, %v59_v6  ;;  %p674_p2 = scmp.ne.s32.totalorder %s523_s12, %s673_s13  ;;  %p679_p4 = scmp.lt.s32.totalorder %s673_s13, %s673_s13 }
  0x2b   :  { %v123_v12 = vsub.f32 %v53_v7, %v122_v8 }
  0x2c   :  { %604 = vmatpush3.bf16.msra.mxu0 %v594_v9  ;;  %595 = vmatpush3.bf16.msra.mxu1 %v594_v9  ;;  %v135_v13 = vand.u32 4294901760, %v134_v10  ;;  %v142_v14 = vand.u32 4294901760, %v141_v11  ;;  %v600_v24 = vpack.c.bf16 %v141_v11, %v134_v10  ;;  %p680_p5 = por %p679_p4, %p678_p3 }
  0x2d   :  { %v124_v15 = vand.u32 4294901760, %v123_v12  ;;  %596 = vmatprep.subr.bf16.mxu1 %v705_v0  ;;  %605 = vmatprep.subr.bf16.mxu0 %v705_v0 }
  0x2e   :  { %v136_v16 = vsub.f32 %v134_v10, %v135_v13  ;;  %v143_v17 = vsub.f32 %v141_v11, %v142_v14  ;;  %v606_v18 = vpack.c.bf16 %v142_v14, %v135_v13  ;;  %p681_p6 = pnand %p680_p5, %p674_p2 }
  0x2f   :  { %577 = vmatmul.mubr.f32.vlgmr.msra.gmra.mrb[0].mxu0 %v124_v15  ;;  %v125_v19 = vsub.f32 %v123_v12, %v124_v15 }
  0x30   :  { %v137_v20 = vand.u32 4294901760, %v136_v16  ;;  %v144_v21 = vand.u32 4294901760, %v143_v17  ;;  %607 = vmatpush3.bf16.msra.mxu0 %v606_v18  ;;  %583 = vmatprep.mubr.msk.f32.mxu0 %vm706_vm0, %v707_v1 }
  0x31   :  { %v126_v22 = vand.u32 4294901760, %v125_v19  ;;  %608 = vmatprep.subr.bf16.mxu0 %v705_v0 }
  0x32   :  { %v597_v23 = vpack.c.bf16 %v144_v21, %v137_v20 }
  0x33   :  { %556 = vmatmul.mubr.f32.vlgmr.msra.gmra.mrb[0].mxu1 %v126_v22 }
  0x34   :  { %598 = vmatpush3.bf16.msra.mxu1 %v597_v23  ;;  %562 = vmatprep.mubr.msk.f32.mxu1 %vm706_vm0, %v707_v1 }
  0x35   :  { %599 = vmatprep.subr.bf16.mxu1 %v705_v0 }
  0x37   :  { %584 = vmatmul.mubr.f32.vlgmr.msra.gmra.mrb[0].mxu0 %v122_v8 }
  0x38   :  { %610 = vmatpush3.bf16.msra.mxu0 %v594_v9  ;;  %590 = vmatprep.mubr.msk.f32.mxu0 %vm706_vm0, %v707_v1 }
  0x3b   :  { %563 = vmatmul.mubr.f32.vlgmr.msra.gmra.mrb[0].mxu1 %v122_v8 }
  0x3c   :  { %601 = vmatpush3.bf16.msra.mxu1 %v600_v24  ;;  %569 = vmatprep.mubr.msk.f32.mxu1 %vm706_vm0, %v707_v1 }
  0x3f   :  { %591 = vmatmul.mubr.f32.vlgmr.msra.gmra.mrb[0].mxu0 %v122_v8 }
  0x43   :  { %570 = vmatmul.mubr.f32.vlgmr.msra.gmra.mrb[0].mxu1 %v123_v12 }
 0x112   :  { %v510_v25 = vpop.f32.mrb[0].mxu0 }
 0x113   :  { %v592_v26 = vpop.f32.mrb[1].mxu0 }
 0x116   :  { %v285_v28 = vpop.f32.mrb[0].mxu1 }
 0x117   :  { %v611_v29 = vadd.f32 %v532_v27, %v285_v28  ;;  %v571_v30 = vpop.f32.mrb[1].mxu1 }
 0x119   :  { %v612_v31 = vadd.f32 %v611_v29, %v510_v25 }
 0x11b   :  { %515 = vst.msk [vmem:[#allocation7] sm:$0xff] %vm514_vm2, %v612_v31 }
 0x11c   :  { %684 = shalt.err (!%p681_p6)
}
 0x11d   :  { %s685_s2 = scalar_lea.hbm %s784_s3, 128 }
 0x11e   :  { %p686_p7 = scmp.ne.s32.totalorder %s784_s3, %s685_s2  ;;  %p689_p8 = scmp.lt.u32.totalorder %s685_s2, %s784_s3 }
 0x120   :  { %p691_p9 = pnand %p689_p8, %p686_p7 }
 0x122   :  { %694 = shalt.err (!%p691_p9)
}
 0x123   :  { %525 = dma.vmem_to_hbm [thread:$0]  %s523_s12, 128, %s784_s3, [#allocation4]  }
 0x124   :  { %699 = dma.done.wait [#allocation4], 128  }
 0x125   :  { %700 = vsyncadd [#allocation4], 4294967168 }
 0x126   :  { %529 = vsyncpa [#allocation3], 1 }
 0x127   :  { %530 = vsyncpa [#allocation6], 1 }
 0x128   :  { %531 = vsyncpa [#allocation4], 1 }

</bundles_post_ra>
